<compile_context>
chip_gen: v7x
topology: tpu7x:2x2x1
jax: 0.10.0
libtpu: 0.0.40
codegen_flags: <defaults>
</compile_context>

<pallas_src>
import numpy as np
import jax
import jax.numpy as jnp
from jax.experimental import pallas as pl
from jax.experimental.pallas import tpu as pltpu

# ----------------------------------------------------------------------------
# cfg (faster-rcnn defaults, shrunk for a small synthetic run)
# ----------------------------------------------------------------------------
TRAIN_BATCH_SIZE = 16          # rois_per_image
FG_FRACTION = 0.25
FG_THRESH = 0.5
BG_THRESH_HI = 0.5
BG_THRESH_LO = 0.0
BBOX_NORMALIZE_MEANS = (0.0, 0.0, 0.0, 0.0)
BBOX_NORMALIZE_STDS = (0.1, 0.1, 0.2, 0.2)
BBOX_INSIDE_WEIGHTS = (1.0, 1.0, 1.0, 1.0)
BBOX_NORMALIZE_TARGETS_PRECOMPUTED = True

LANE = 128


def _round_up(x, m):
    return (x + m - 1) // m * m


def _pick_lane_tiling(n, per_lane_bytes, budget_bytes=6 << 20, max_tile_lanes=16):
    """Pick (tile, padded_n) for a lane-tiled kernel.

    * tile is as large as the VMEM budget for the per-lane temporaries allows
      (capped at max_tile_lanes*128 lanes) so per-grid-step overhead is amortized.
    * when there are >= 2 lane-groups we force at least two tiles so
      dimension_semantics=("parallel",) can shard across both TensorCores (v7x).
    * padded_n is a multiple of tile (wrapper pads inputs to padded_n).
    """
    n_pad = _round_up(n, LANE)
    n_lanes = n_pad // LANE
    budget_lanes = max(1, min(max_tile_lanes,
                              (budget_bytes // max(per_lane_bytes, 1)) // LANE))
    n_tiles = max(1, -(-n_lanes // budget_lanes))
    if n_lanes >= 2 and n_tiles < 2:
        n_tiles = 2
    tile_lanes = -(-n_lanes // n_tiles)
    tile = tile_lanes * LANE
    return tile, tile * n_tiles


# ----------------------------------------------------------------------------
# Kernel 1: pairwise IoU (bbox_overlaps_batch) + max / first-argmax / label.
#   rois_ref : (B, 4, TILE)   proposal coords, proposals lane-dense
#   gt_ref   : (B, K, 5)      gt boxes + class label (grid-invariant block)
#   out_ref  : (B, 4, TILE)   row0=max_overlap, row1=argmax(float), row2=label,
#                             row3=0 (kept for 4-sublane alignment)
# ----------------------------------------------------------------------------
def _iou_kernel(rois_ref, gt_ref, out_ref):
    r = rois_ref[...]                                  # (B, 4, T)
    g = gt_ref[...]                                    # (B, K, 5)
    K = g.shape[1]

    rx1 = r[:, 0:1, :]; ry1 = r[:, 1:2, :]
    rx2 = r[:, 2:3, :]; ry2 = r[:, 3:4, :]             # (B, 1, T)

    gx1 = g[:, :, 0:1]; gy1 = g[:, :, 1:2]
    gx2 = g[:, :, 2:3]; gy2 = g[:, :, 3:4]             # (B, K, 1)
    glab = g[:, :, 4:5]                                # (B, K, 1)

    a_w = rx2 - rx1 + 1.0
    a_h = ry2 - ry1 + 1.0
    a_area = a_w * a_h                                 # (B, 1, T)
    g_w = gx2 - gx1 + 1.0
    g_h = gy2 - gy1 + 1.0
    g_area = g_w * g_h                                 # (B, K, 1)

    a_zero = jnp.logical_and(a_w == 1.0, a_h == 1.0)       # (B, 1, T)
    g_zero = jnp.logical_and(g_w == 1.0, g_h == 1.0)       # (B, K, 1)

    iw = jnp.maximum(jnp.minimum(rx2, gx2) - jnp.maximum(rx1, gx1) + 1.0, 0.0)  # (B,K,T)
    ih = jnp.maximum(jnp.minimum(ry2, gy2) - jnp.maximum(ry1, gy1) + 1.0, 0.0)
    inter = iw * ih
    ua = a_area + g_area - inter
    # Exact divide (no approx reciprocal): overlaps at the 0.5 fg/bg threshold
    # must not flip vs the reference.
    ov = inter / ua                                    # (B, K, T)
    ov = jnp.where(jnp.broadcast_to(g_zero, ov.shape), 0.0, ov)
    ov = jnp.where(jnp.broadcast_to(a_zero, ov.shape), -1.0, ov)

    # Sublane (XLU) reductions over K: max, first-index argmax, label gather.
    best_ov = jnp.max(ov, axis=1, keepdims=True)                       # (B,1,T)
    kidx = jax.lax.broadcasted_iota(jnp.int32, ov.shape, 1)            # (B,K,T)
    is_best = ov == best_ov
    best_k = jnp.min(jnp.where(is_best, kidx, jnp.int32(K)),
                     axis=1, keepdims=True)                            # (B,1,T)
    lab_b = jnp.broadcast_to(glab, ov.shape)
    best_lab = jnp.max(jnp.where(kidx == best_k, lab_b, -1.0),
                       axis=1, keepdims=True)                          # (B,1,T)

    # Direct sub-slice stores (no sublane-axis concatenate).
    out_ref[:, 0:1, :] = best_ov
    out_ref[:, 1:2, :] = best_k.astype(jnp.float32)
    out_ref[:, 2:3, :] = best_lab
    out_ref[:, 3:4, :] = jnp.zeros_like(best_ov)


def iou_max_pallas(rois_t, gt_boxes, tile):
    """rois_t: (B, 4, Np) f32 (Np multiple of tile); gt_boxes: (B, K, 5) f32."""
    B, _, Np = rois_t.shape
    K = gt_boxes.shape[1]
    n_tiles = Np // tile
    return pl.pallas_call(
        _iou_kernel,
        out_shape=jax.ShapeDtypeStruct((B, 4, Np), jnp.float32),
        grid=(n_tiles,),
        in_specs=[
            pl.BlockSpec((B, 4, tile), lambda i: (0, 0, i)),
            pl.BlockSpec((B, K, 5), lambda i: (0, 0, 0)),
        ],
        out_specs=pl.BlockSpec((B, 4, tile), lambda i: (0, 0, i)),
        compiler_params=pltpu.CompilerParams(
            dimension_semantics=("parallel",),
            vmem_limit_bytes=32 * 1024 * 1024),   # headroom for larger B/K tiles
    )(rois_t, gt_boxes)


# ----------------------------------------------------------------------------
# Kernel 2: bbox_transform_batch + normalization + fg masking + inside weights.
#   pk_ref  : (B, 9, TILE)  rows 0-3 = sampled roi coords, 4-7 = assigned gt
#                            coords, 8 = label   (single packed DMA stream)
#   out_ref : (B, 8, TILE)  rows 0-3 = bbox targets, rows 4-7 = inside weights
# cfg constants are baked in at trace time (no VMEM inputs / DMA for them).
# ----------------------------------------------------------------------------
def _targets_kernel(pk_ref, out_ref):
    p = pk_ref[...]                                    # (B, 9, T)

    ex_x1 = p[:, 0:1, :]; ex_y1 = p[:, 1:2, :]
    ex_x2 = p[:, 2:3, :]; ex_y2 = p[:, 3:4, :]
    gt_x1 = p[:, 4:5, :]; gt_y1 = p[:, 5:6, :]
    gt_x2 = p[:, 6:7, :]; gt_y2 = p[:, 7:8, :]
    lab = p[:, 8:9, :]

    ex_w = ex_x2 - ex_x1 + 1.0
    ex_h = ex_y2 - ex_y1 + 1.0
    ex_cx = ex_x1 + 0.5 * ex_w
    ex_cy = ex_y1 + 0.5 * ex_h
    gt_w = gt_x2 - gt_x1 + 1.0
    gt_h = gt_y2 - gt_y1 + 1.0
    gt_cx = gt_x1 + 0.5 * gt_w
    gt_cy = gt_y1 + 0.5 * gt_h

    # Exact divides (tiny R; keeps numerics faithful to the reference).
    dx = (gt_cx - ex_cx) / ex_w
    dy = (gt_cy - ex_cy) / ex_h
    dw = jnp.log(gt_w / ex_w)
    dh = jnp.log(gt_h / ex_h)

    if BBOX_NORMALIZE_TARGETS_PRECOMPUTED:
        m = BBOX_NORMALIZE_MEANS
        s = BBOX_NORMALIZE_STDS
        dx = (dx - m[0]) / s[0]
        dy = (dy - m[1]) / s[1]
        dw = (dw - m[2]) / s[2]
        dh = (dh - m[3]) / s[3]

    fg = lab > 0.0                                     # (B, 1, T)
    zero = jnp.zeros_like(dx)
    fg_f = jnp.where(fg, 1.0, zero)                    # computed once

    out_ref[:, 0:1, :] = jnp.where(fg, dx, zero)
    out_ref[:, 1:2, :] = jnp.where(fg, dy, zero)
    out_ref[:, 2:3, :] = jnp.where(fg, dw, zero)
    out_ref[:, 3:4, :] = jnp.where(fg, dh, zero)
    for i, bw in enumerate(BBOX_INSIDE_WEIGHTS):
        out_ref[:, 4 + i:5 + i, :] = fg_f if bw == 1.0 else fg_f * jnp.float32(bw)


def targets_pallas(packed_t, tile):
    """packed_t: (B, 9, Rp) f32, Rp multiple of tile."""
    B, rows, Rp = packed_t.shape
    n_tiles = Rp // tile
    return pl.pallas_call(
        _targets_kernel,
        out_shape=jax.ShapeDtypeStruct((B, 8, Rp), jnp.float32),
        grid=(n_tiles,),
        in_specs=[pl.BlockSpec((B, rows, tile), lambda i: (0, 0, i))],
        out_specs=pl.BlockSpec((B, 8, tile), lambda i: (0, 0, i)),
        compiler_params=pltpu.CompilerParams(
            dimension_semantics=("parallel",),
            vmem_limit_bytes=32 * 1024 * 1024),
    )(packed_t)


# ----------------------------------------------------------------------------
# On-device fg/bg subsampling (replaces the host numpy loop of the reference).
# fg subset w/o replacement: top_k over keyed fg mask (no full argsort).
# With-replacement picks (bg tail, degenerate branches): cumsum + searchsorted.
# Driven by jax.random instead of global np.random.
# ----------------------------------------------------------------------------
def _sample_rois_device(all_rois, labels_all, max_overlaps, gt_assignment,
                        gt_boxes, fg_rois_per_image, rois_per_image, key):
    B, N, _ = all_rois.shape
    keys = jax.random.split(key, B)
    slots = jnp.arange(rois_per_image, dtype=jnp.int32)
    topk = min(rois_per_image, N)

    def per_image(rois_i, labels_i, mo_i, ga_i, gt_i, k, batch_idx):
        kfg, kslot = jax.random.split(k, 2)
        fg_mask = mo_i >= FG_THRESH
        bg_mask = jnp.logical_and(mo_i < BG_THRESH_HI, mo_i >= BG_THRESH_LO)
        fg_num = jnp.sum(fg_mask.astype(jnp.int32))
        bg_num = jnp.sum(bg_mask.astype(jnp.int32))

        # Random fg subset without replacement, in random order.
        rand_keys = jax.random.uniform(kfg, (N,))
        _, fg_order = jax.lax.top_k(jnp.where(fg_mask, rand_keys, -1.0), topk)
        fg_order = fg_order.astype(jnp.int32)
        if topk < rois_per_image:
            fg_order = jnp.pad(fg_order, (0, rois_per_image - topk))

        # With-replacement picks via rank -> index lookup (no sort).
        u = jax.random.uniform(kslot, (rois_per_image,))
        fg_csum = jnp.cumsum(fg_mask.astype(jnp.int32))
        bg_csum = jnp.cumsum(bg_mask.astype(jnp.int32))
        fg_t = jnp.floor(u * fg_num.astype(jnp.float32)).astype(jnp.int32)
        bg_t = jnp.floor(u * bg_num.astype(jnp.float32)).astype(jnp.int32)
        fg_pick = jnp.searchsorted(fg_csum, fg_t + 1,
                                   method="compare_all").astype(jnp.int32)
        bg_pick = jnp.searchsorted(bg_csum, bg_t + 1,
                                   method="compare_all").astype(jnp.int32)

        fg_this_a = jnp.minimum(fg_rois_per_image, fg_num)
        keep_a = jnp.where(slots < fg_this_a, fg_order, bg_pick)  # fg & bg
        keep_b = fg_pick                                          # fg only
        keep_c = bg_pick                                          # bg only

        has_fg = fg_num > 0
        has_bg = bg_num > 0
        # TODO(synk): the reference raises ValueError when fg_num==0 and bg_num==0;
        # that data-dependent error cannot be raised from traced device code.
        keep = jnp.where(jnp.logical_and(has_fg, has_bg), keep_a,
                         jnp.where(has_fg, keep_b, keep_c))
        fg_this = jnp.where(jnp.logical_and(has_fg, has_bg), fg_this_a,
                            jnp.where(has_fg, rois_per_image, 0))

        keep = jnp.clip(keep, 0, N - 1)
        labels_sel = jnp.where(slots < fg_this, labels_i[keep], 0.0)
        rois_sel = rois_i[keep]                                   # (R, 5)
        rois_sel = rois_sel.at[:, 0].set(batch_idx.astype(rois_sel.dtype))
        gt_sel = gt_i[ga_i[keep]]                                 # (R, 5)
        return labels_sel, rois_sel, gt_sel

    batch_ids = jnp.arange(B, dtype=jnp.float32)
    return jax.vmap(per_image)(all_rois, labels_all, max_overlaps,
                               gt_assignment, gt_boxes, keys, batch_ids)


# ----------------------------------------------------------------------------
# Full forward: mirrors _ProposalTargetLayer.forward (fully on-device, jittable)
# ----------------------------------------------------------------------------
def proposal_target_forward(all_rois, gt_boxes, num_boxes, key):
    del num_boxes  # unused by the reference forward path
    gt_boxes = gt_boxes.astype(jnp.float32)
    gt_append = jnp.zeros_like(gt_boxes)
    gt_append = gt_append.at[:, :, 1:5].set(gt_boxes[:, :, :4])
    all_rois_cat = jnp.concatenate([all_rois.astype(jnp.float32), gt_append],
                                   axis=1)                      # (B, N, 5)
    B, N, _ = all_rois_cat.shape
    K = gt_boxes.shape[1]

    num_images = 1
    rois_per_image = int(TRAIN_BATCH_SIZE / num_images)
    fg_rois_per_image = int(np.round(FG_FRACTION * rois_per_image))
    fg_rois_per_image = 1 if fg_rois_per_image == 0 else fg_rois_per_image

    # ---- kernel 1: IoU + max/argmax/label (proposals lane-dense) -----------
    # ~10 live (B, K, TILE) f32 temporaries -> budget against v5e's 16 MiB scoped VMEM.
    tile_n, Np = _pick_lane_tiling(N, per_lane_bytes=10 * B * max(K, 1) * 4)
    rois_t = jnp.transpose(all_rois_cat[:, :, 1:5], (0, 2, 1))   # (B, 4, N)
    rois_t = jnp.pad(rois_t, ((0, 0), (0, 0), (0, Np - N)))      # zero boxes -> ignored
    slab = iou_max_pallas(rois_t, gt_boxes, tile_n)              # (B, 4, Np)
    slab = slab[:, :, :N]                                        # single pull
    max_overlaps = slab[:, 0, :]
    gt_assignment = slab[:, 1, :].astype(jnp.int32)
    labels_all = slab[:, 2, :]

    # ---- on-device fg/bg subsampling (no host round-trip) ------------------
    labels_batch, rois_batch, gt_rois_batch = _sample_rois_device(
        all_rois_cat, labels_all, max_overlaps, gt_assignment, gt_boxes,
        fg_rois_per_image, rois_per_image, key)

    # ---- kernel 2: bbox regression targets (rois lane-dense) ---------------
    R = rois_per_image
    tile_r, Rp = _pick_lane_tiling(R, per_lane_bytes=24 * B * 4)
    packed = jnp.concatenate(
        [rois_batch[:, :, 1:5], gt_rois_batch[:, :, :4], labels_batch[:, :, None]],
        axis=-1)                                                 # (B, R, 9)
    packed = jnp.transpose(packed, (0, 2, 1))                    # (B, 9, R)
    packed = jnp.pad(packed, ((0, 0), (0, 0), (0, Rp - R)))

    tslab = targets_pallas(packed, tile_r)                       # (B, 8, Rp)
    tgt = jnp.transpose(tslab[:, :, :R], (0, 2, 1))              # (B, R, 8) single pull
    bbox_targets = tgt[:, :, 0:4]
    bbox_inside_w = tgt[:, :, 4:8]
    if all(w == 1.0 for w in BBOX_INSIDE_WEIGHTS):
        bbox_outside_w = bbox_inside_w        # identical when weights are all 1.0
    else:
        bbox_outside_w = (bbox_inside_w > 0.0).astype(jnp.float32)

    return rois_batch, labels_batch, bbox_targets, bbox_inside_w, bbox_outside_w


# ----------------------------------------------------------------------------
# Deterministic synthetic inputs
# ----------------------------------------------------------------------------
def _rand_boxes(key, b, n):
    kx, ky, kw, kh = jax.random.split(key, 4)
    x1 = jax.random.uniform(kx, (b, n, 1), minval=0.0, maxval=40.0)
    y1 = jax.random.uniform(ky, (b, n, 1), minval=0.0, maxval=40.0)
    w = jax.random.uniform(kw, (b, n, 1), minval=8.0, maxval=24.0)
    h = jax.random.uniform(kh, (b, n, 1), minval=8.0, maxval=24.0)
    return jnp.concatenate([x1, y1, x1 + w, y1 + h], axis=-1)


if __name__ == "__main__":
    B, Nr, K = 2, 12, 8
    num_classes = 5

    key = jax.random.PRNGKey(0)
    k1, k2, k3, ksample = jax.random.split(key, 4)

    rois_xy = _rand_boxes(k1, B, Nr)
    batch_idx = jnp.broadcast_to(
        jnp.arange(B, dtype=jnp.float32)[:, None, None], (B, Nr, 1))
    all_rois = jnp.concatenate([batch_idx, rois_xy], axis=-1).astype(jnp.float32)

    gt_xy = _rand_boxes(k2, B, K)
    gt_lab = jax.random.randint(k3, (B, K, 1), 1, num_classes).astype(jnp.float32)
    gt5 = jnp.concatenate([gt_xy, gt_lab], axis=-1)
    n_valid = jnp.array([3, 4])
    valid = jnp.arange(K)[None, :, None] < n_valid[:, None, None]
    gt_boxes = jnp.where(valid, gt5, 0.0).astype(jnp.float32)
    num_boxes = n_valid.astype(jnp.int32)

    forward = jax.jit(proposal_target_forward)
    rois, labels, bbox_targets, bbox_iw, bbox_ow = forward(
        all_rois, gt_boxes, num_boxes, ksample)

    jax.block_until_ready((rois, labels, bbox_targets, bbox_iw, bbox_ow))

    assert rois.shape == (B, TRAIN_BATCH_SIZE, 5)
    assert labels.shape == (B, TRAIN_BATCH_SIZE)
    assert bbox_targets.shape == (B, TRAIN_BATCH_SIZE, 4)
    assert bbox_iw.shape == (B, TRAIN_BATCH_SIZE, 4)
    assert bbox_ow.shape == (B, TRAIN_BATCH_SIZE, 4)
    assert bool(jnp.all(jnp.isfinite(bbox_targets)))
    assert bool(jnp.all((labels >= 0) & (labels < num_classes)))

    print("KERNEL_OK")
</pallas_src>

<mosaic_0001>
module attributes {stable_mosaic.version = 11 : i64} {
  func.func @_iou_kernel(%arg0: i32, %arg1: memref<2x4x128xf32, #tpu.memory_space<vmem>>, %arg2: memref<2x8x5xf32, #tpu.memory_space<vmem>>, %arg3: memref<2x4x128xf32, #tpu.memory_space<vmem>>) attributes {dimension_semantics = [#tpu.dimension_semantics<parallel>], iteration_bounds = array<i64: 1>, scalar_prefetch = 0 : i64, scratch_operands = 0 : i64, tpu.core_type = #tpu.core_type<tc>, window_params = [{transform_indices = @transform_0, window_bounds = array<i64: 2, 4, 128>}, {pipeline_mode = #tpu.pipeline_mode<synchronous>, transform_indices = @transform_1, window_bounds = array<i64: 2, 8, 5>}, {transform_indices = @transform_2, window_bounds = array<i64: 2, 4, 128>}]} {
    %c0 = arith.constant 0 : index
    %c0_0 = arith.constant 0 : index
    %c0_1 = arith.constant 0 : index
    %0 = vector.load %arg1[%c0, %c0_0, %c0_1] : memref<2x4x128xf32, #tpu.memory_space<vmem>>, vector<2x4x128xf32>
    %c0_2 = arith.constant 0 : index
    %c0_3 = arith.constant 0 : index
    %c0_4 = arith.constant 0 : index
    %1 = vector.load %arg2[%c0_2, %c0_3, %c0_4] : memref<2x8x5xf32, #tpu.memory_space<vmem>>, vector<2x8x5xf32>
    %2 = vector.extract_strided_slice %0 {offsets = [0, 0, 0], sizes = [2, 1, 128], strides = [1, 1, 1]} : vector<2x4x128xf32> to vector<2x1x128xf32>
    %3 = vector.extract_strided_slice %0 {offsets = [0, 1, 0], sizes = [2, 1, 128], strides = [1, 1, 1]} : vector<2x4x128xf32> to vector<2x1x128xf32>
    %4 = vector.extract_strided_slice %0 {offsets = [0, 2, 0], sizes = [2, 1, 128], strides = [1, 1, 1]} : vector<2x4x128xf32> to vector<2x1x128xf32>
    %5 = vector.extract_strided_slice %0 {offsets = [0, 3, 0], sizes = [2, 1, 128], strides = [1, 1, 1]} : vector<2x4x128xf32> to vector<2x1x128xf32>
    %6 = vector.extract_strided_slice %1 {offsets = [0, 0, 0], sizes = [2, 8, 1], strides = [1, 1, 1]} : vector<2x8x5xf32> to vector<2x8x1xf32>
    %7 = vector.extract_strided_slice %1 {offsets = [0, 0, 1], sizes = [2, 8, 1], strides = [1, 1, 1]} : vector<2x8x5xf32> to vector<2x8x1xf32>
    %8 = vector.extract_strided_slice %1 {offsets = [0, 0, 2], sizes = [2, 8, 1], strides = [1, 1, 1]} : vector<2x8x5xf32> to vector<2x8x1xf32>
    %9 = vector.extract_strided_slice %1 {offsets = [0, 0, 3], sizes = [2, 8, 1], strides = [1, 1, 1]} : vector<2x8x5xf32> to vector<2x8x1xf32>
    %10 = vector.extract_strided_slice %1 {offsets = [0, 0, 4], sizes = [2, 8, 1], strides = [1, 1, 1]} : vector<2x8x5xf32> to vector<2x8x1xf32>
    %11 = arith.subf %4, %2 : vector<2x1x128xf32>
    %cst = arith.constant 1.000000e+00 : f32
    %12 = vector.broadcast %cst : f32 to vector<2x1x128xf32>
    %13 = arith.addf %11, %12 : vector<2x1x128xf32>
    %14 = arith.subf %5, %3 : vector<2x1x128xf32>
    %cst_5 = arith.constant 1.000000e+00 : f32
    %15 = vector.broadcast %cst_5 : f32 to vector<2x1x128xf32>
    %16 = arith.addf %14, %15 : vector<2x1x128xf32>
    %17 = arith.mulf %13, %16 : vector<2x1x128xf32>
    %18 = arith.subf %8, %6 : vector<2x8x1xf32>
    %cst_6 = arith.constant 1.000000e+00 : f32
    %19 = vector.broadcast %cst_6 : f32 to vector<2x8x1xf32>
    %20 = arith.addf %18, %19 : vector<2x8x1xf32>
    %21 = arith.subf %9, %7 : vector<2x8x1xf32>
    %cst_7 = arith.constant 1.000000e+00 : f32
    %22 = vector.broadcast %cst_7 : f32 to vector<2x8x1xf32>
    %23 = arith.addf %21, %22 : vector<2x8x1xf32>
    %24 = arith.mulf %20, %23 : vector<2x8x1xf32>
    %cst_8 = arith.constant 1.000000e+00 : f32
    %25 = vector.broadcast %cst_8 : f32 to vector<2x1x128xf32>
    %26 = arith.cmpf oeq, %13, %25 : vector<2x1x128xf32>
    %cst_9 = arith.constant 1.000000e+00 : f32
    %27 = vector.broadcast %cst_9 : f32 to vector<2x1x128xf32>
    %28 = arith.cmpf oeq, %16, %27 : vector<2x1x128xf32>
    %29 = arith.andi %26, %28 : vector<2x1x128xi1>
    %cst_10 = arith.constant 1.000000e+00 : f32
    %30 = vector.broadcast %cst_10 : f32 to vector<2x8x1xf32>
    %31 = arith.cmpf oeq, %20, %30 : vector<2x8x1xf32>
    %cst_11 = arith.constant 1.000000e+00 : f32
    %32 = vector.broadcast %cst_11 : f32 to vector<2x8x1xf32>
    %33 = arith.cmpf oeq, %23, %32 : vector<2x8x1xf32>
    %34 = arith.andi %31, %33 : vector<2x8x1xi1>
    %35 = vector.broadcast %4 : vector<2x1x128xf32> to vector<2x8x128xf32>
    %36 = vector.broadcast %8 : vector<2x8x1xf32> to vector<2x8x128xf32>
    %37 = arith.minimumf %35, %36 : vector<2x8x128xf32>
    %38 = vector.broadcast %2 : vector<2x1x128xf32> to vector<2x8x128xf32>
    %39 = vector.broadcast %6 : vector<2x8x1xf32> to vector<2x8x128xf32>
    %40 = arith.maximumf %38, %39 : vector<2x8x128xf32>
    %41 = arith.subf %37, %40 : vector<2x8x128xf32>
    %cst_12 = arith.constant 1.000000e+00 : f32
    %42 = vector.broadcast %cst_12 : f32 to vector<2x8x128xf32>
    %43 = arith.addf %41, %42 : vector<2x8x128xf32>
    %cst_13 = arith.constant 0.000000e+00 : f32
    %44 = vector.broadcast %cst_13 : f32 to vector<2x8x128xf32>
    %45 = arith.maximumf %43, %44 : vector<2x8x128xf32>
    %46 = vector.broadcast %5 : vector<2x1x128xf32> to vector<2x8x128xf32>
    %47 = vector.broadcast %9 : vector<2x8x1xf32> to vector<2x8x128xf32>
    %48 = arith.minimumf %46, %47 : vector<2x8x128xf32>
    %49 = vector.broadcast %3 : vector<2x1x128xf32> to vector<2x8x128xf32>
    %50 = vector.broadcast %7 : vector<2x8x1xf32> to vector<2x8x128xf32>
    %51 = arith.maximumf %49, %50 : vector<2x8x128xf32>
    %52 = arith.subf %48, %51 : vector<2x8x128xf32>
    %cst_14 = arith.constant 1.000000e+00 : f32
    %53 = vector.broadcast %cst_14 : f32 to vector<2x8x128xf32>
    %54 = arith.addf %52, %53 : vector<2x8x128xf32>
    %cst_15 = arith.constant 0.000000e+00 : f32
    %55 = vector.broadcast %cst_15 : f32 to vector<2x8x128xf32>
    %56 = arith.maximumf %54, %55 : vector<2x8x128xf32>
    %57 = arith.mulf %45, %56 : vector<2x8x128xf32>
    %58 = vector.broadcast %17 : vector<2x1x128xf32> to vector<2x8x128xf32>
    %59 = vector.broadcast %24 : vector<2x8x1xf32> to vector<2x8x128xf32>
    %60 = arith.addf %58, %59 : vector<2x8x128xf32>
    %61 = arith.subf %60, %57 : vector<2x8x128xf32>
    %62 = arith.divf %57, %61 : vector<2x8x128xf32>
    %63 = vector.shape_cast %34 : vector<2x8x1xi1> to vector<2x8x1xi1>
    %64 = vector.broadcast %63 : vector<2x8x1xi1> to vector<2x8x128xi1>
    %cst_16 = arith.constant 0.000000e+00 : f32
    %65 = vector.broadcast %cst_16 : f32 to vector<2x8x128xf32>
    %66 = arith.select %64, %65, %62 : vector<2x8x128xi1>, vector<2x8x128xf32>
    %67 = vector.shape_cast %29 : vector<2x1x128xi1> to vector<2x1x128xi1>
    %68 = vector.broadcast %67 : vector<2x1x128xi1> to vector<2x8x128xi1>
    %cst_17 = arith.constant -1.000000e+00 : f32
    %69 = vector.broadcast %cst_17 : f32 to vector<2x8x128xf32>
    %70 = arith.select %68, %69, %66 : vector<2x8x128xi1>, vector<2x8x128xf32>
    %cst_18 = arith.constant dense<0xFF800000> : vector<2x128xf32>
    %71 = vector.multi_reduction <maximumf>, %70, %cst_18 [1] : vector<2x8x128xf32> to vector<2x128xf32>
    %72 = vector.shape_cast %71 : vector<2x128xf32> to vector<2x1x128xf32>
    %73 = tpu.iota {dimensions = array<i32: 1>} : vector<2x8x128xi32>
    %74 = vector.broadcast %72 : vector<2x1x128xf32> to vector<2x8x128xf32>
    %75 = arith.cmpf oeq, %70, %74 : vector<2x8x128xf32>
    %c8_i32 = arith.constant 8 : i32
    %76 = vector.broadcast %c8_i32 : i32 to vector<2x8x128xi32>
    %77 = arith.select %75, %73, %76 : vector<2x8x128xi1>, vector<2x8x128xi32>
    %cst_19 = arith.constant dense<2147483647> : vector<2x128xi32>
    %78 = vector.multi_reduction <minsi>, %77, %cst_19 [1] : vector<2x8x128xi32> to vector<2x128xi32>
    %79 = vector.shape_cast %78 : vector<2x128xi32> to vector<2x1x128xi32>
    %80 = vector.shape_cast %10 : vector<2x8x1xf32> to vector<2x8x1xf32>
    %81 = vector.broadcast %80 : vector<2x8x1xf32> to vector<2x8x128xf32>
    %82 = vector.broadcast %79 : vector<2x1x128xi32> to vector<2x8x128xi32>
    %83 = arith.cmpi eq, %73, %82 : vector<2x8x128xi32>
    %cst_20 = arith.constant -1.000000e+00 : f32
    %84 = vector.broadcast %cst_20 : f32 to vector<2x8x128xf32>
    %85 = arith.select %83, %81, %84 : vector<2x8x128xi1>, vector<2x8x128xf32>
    %cst_21 = arith.constant dense<0xFF800000> : vector<2x128xf32>
    %86 = vector.multi_reduction <maximumf>, %85, %cst_21 [1] : vector<2x8x128xf32> to vector<2x128xf32>
    %87 = vector.shape_cast %86 : vector<2x128xf32> to vector<2x1x128xf32>
    %c0_22 = arith.constant 0 : index
    %c0_23 = arith.constant 0 : index
    %c0_24 = arith.constant 0 : index
    %88 = vector.load %arg3[%c0_22, %c0_23, %c0_24] : memref<2x4x128xf32, #tpu.memory_space<vmem>>, vector<2x1x128xf32>
    tpu.vector_store %arg3[%c0_22, %c0_23, %c0_24], %72 {strides = array<i32>} : memref<2x4x128xf32, #tpu.memory_space<vmem>>, vector<2x1x128xf32>,
    %89 = arith.sitofp %79 : vector<2x1x128xi32> to vector<2x1x128xf32>
    %c0_25 = arith.constant 0 : index
    %c1 = arith.constant 1 : index
    %c0_26 = arith.constant 0 : index
    %90 = vector.load %arg3[%c0_25, %c1, %c0_26] : memref<2x4x128xf32, #tpu.memory_space<vmem>>, vector<2x1x128xf32>
    tpu.vector_store %arg3[%c0_25, %c1, %c0_26], %89 {strides = array<i32>} : memref<2x4x128xf32, #tpu.memory_space<vmem>>, vector<2x1x128xf32>,
    %c0_27 = arith.constant 0 : index
    %c2 = arith.constant 2 : index
    %c0_28 = arith.constant 0 : index
    %91 = vector.load %arg3[%c0_27, %c2, %c0_28] : memref<2x4x128xf32, #tpu.memory_space<vmem>>, vector<2x1x128xf32>
    tpu.vector_store %arg3[%c0_27, %c2, %c0_28], %87 {strides = array<i32>} : memref<2x4x128xf32, #tpu.memory_space<vmem>>, vector<2x1x128xf32>,
    %cst_29 = arith.constant 0.000000e+00 : f32
    %92 = vector.broadcast %cst_29 : f32 to vector<2x1x128xf32>
    %c0_30 = arith.constant 0 : index
    %c3 = arith.constant 3 : index
    %c0_31 = arith.constant 0 : index
    %93 = vector.load %arg3[%c0_30, %c3, %c0_31] : memref<2x4x128xf32, #tpu.memory_space<vmem>>, vector<2x1x128xf32>
    tpu.vector_store %arg3[%c0_30, %c3, %c0_31], %92 {strides = array<i32>} : memref<2x4x128xf32, #tpu.memory_space<vmem>>, vector<2x1x128xf32>,
    return
  }
  func.func @transform_0(%arg0: i32) -> (i32, i32, i32) {
    %c0_i32 = arith.constant 0 : i32
    %c0_i32_0 = arith.constant 0 : i32
    %c0_i32_1 = arith.constant 0 : i32
    return %c0_i32, %c0_i32_0, %arg0 : i32, i32, i32
  }
  func.func @transform_1(%arg0: i32) -> (i32, i32, i32) {
    %c0_i32 = arith.constant 0 : i32
    %c0_i32_0 = arith.constant 0 : i32
    %c0_i32_1 = arith.constant 0 : i32
    %c0_i32_2 = arith.constant 0 : i32
    return %c0_i32, %c0_i32_0, %c0_i32_1 : i32, i32, i32
  }
  func.func @transform_2(%arg0: i32) -> (i32, i32, i32) {
    %c0_i32 = arith.constant 0 : i32
    %c0_i32_0 = arith.constant 0 : i32
    %c0_i32_1 = arith.constant 0 : i32
    return %c0_i32, %c0_i32_0, %arg0 : i32, i32, i32
  }
}

module attributes {stable_mosaic.version = 11 : i64} {
  func.func @_targets_kernel(%arg0: i32, %arg1: memref<2x9x128xf32, #tpu.memory_space<vmem>>, %arg2: memref<2x8x128xf32, #tpu.memory_space<vmem>>) attributes {dimension_semantics = [#tpu.dimension_semantics<parallel>], iteration_bounds = array<i64: 1>, scalar_prefetch = 0 : i64, scratch_operands = 0 : i64, tpu.core_type = #tpu.core_type<tc>, window_params = [{transform_indices = @transform_0, window_bounds = array<i64: 2, 9, 128>}, {transform_indices = @transform_1, window_bounds = array<i64: 2, 8, 128>}]} {
    %c0 = arith.constant 0 : index
    %c0_0 = arith.constant 0 : index
    %c0_1 = arith.constant 0 : index
    %0 = vector.load %arg1[%c0, %c0_0, %c0_1] : memref<2x9x128xf32, #tpu.memory_space<vmem>>, vector<2x9x128xf32>
    %1 = vector.extract_strided_slice %0 {offsets = [0, 0, 0], sizes = [2, 1, 128], strides = [1, 1, 1]} : vector<2x9x128xf32> to vector<2x1x128xf32>
    %2 = vector.extract_strided_slice %0 {offsets = [0, 1, 0], sizes = [2, 1, 128], strides = [1, 1, 1]} : vector<2x9x128xf32> to vector<2x1x128xf32>
    %3 = vector.extract_strided_slice %0 {offsets = [0, 2, 0], sizes = [2, 1, 128], strides = [1, 1, 1]} : vector<2x9x128xf32> to vector<2x1x128xf32>
    %4 = vector.extract_strided_slice %0 {offsets = [0, 3, 0], sizes = [2, 1, 128], strides = [1, 1, 1]} : vector<2x9x128xf32> to vector<2x1x128xf32>
    %5 = vector.extract_strided_slice %0 {offsets = [0, 4, 0], sizes = [2, 1, 128], strides = [1, 1, 1]} : vector<2x9x128xf32> to vector<2x1x128xf32>
    %6 = vector.extract_strided_slice %0 {offsets = [0, 5, 0], sizes = [2, 1, 128], strides = [1, 1, 1]} : vector<2x9x128xf32> to vector<2x1x128xf32>
    %7 = vector.extract_strided_slice %0 {offsets = [0, 6, 0], sizes = [2, 1, 128], strides = [1, 1, 1]} : vector<2x9x128xf32> to vector<2x1x128xf32>
    %8 = vector.extract_strided_slice %0 {offsets = [0, 7, 0], sizes = [2, 1, 128], strides = [1, 1, 1]} : vector<2x9x128xf32> to vector<2x1x128xf32>
    %9 = vector.extract_strided_slice %0 {offsets = [0, 8, 0], sizes = [2, 1, 128], strides = [1, 1, 1]} : vector<2x9x128xf32> to vector<2x1x128xf32>
    %10 = arith.subf %3, %1 : vector<2x1x128xf32>
    %cst = arith.constant 1.000000e+00 : f32
    %11 = vector.broadcast %cst : f32 to vector<2x1x128xf32>
    %12 = arith.addf %10, %11 : vector<2x1x128xf32>
    %13 = arith.subf %4, %2 : vector<2x1x128xf32>
    %cst_2 = arith.constant 1.000000e+00 : f32
    %14 = vector.broadcast %cst_2 : f32 to vector<2x1x128xf32>
    %15 = arith.addf %13, %14 : vector<2x1x128xf32>
    %cst_3 = arith.constant 5.000000e-01 : f32
    %16 = vector.broadcast %cst_3 : f32 to vector<2x1x128xf32>
    %17 = arith.mulf %16, %12 : vector<2x1x128xf32>
    %18 = arith.addf %1, %17 : vector<2x1x128xf32>
    %cst_4 = arith.constant 5.000000e-01 : f32
    %19 = vector.broadcast %cst_4 : f32 to vector<2x1x128xf32>
    %20 = arith.mulf %19, %15 : vector<2x1x128xf32>
    %21 = arith.addf %2, %20 : vector<2x1x128xf32>
    %22 = arith.subf %7, %5 : vector<2x1x128xf32>
    %cst_5 = arith.constant 1.000000e+00 : f32
    %23 = vector.broadcast %cst_5 : f32 to vector<2x1x128xf32>
    %24 = arith.addf %22, %23 : vector<2x1x128xf32>
    %25 = arith.subf %8, %6 : vector<2x1x128xf32>
    %cst_6 = arith.constant 1.000000e+00 : f32
    %26 = vector.broadcast %cst_6 : f32 to vector<2x1x128xf32>
    %27 = arith.addf %25, %26 : vector<2x1x128xf32>
    %cst_7 = arith.constant 5.000000e-01 : f32
    %28 = vector.broadcast %cst_7 : f32 to vector<2x1x128xf32>
    %29 = arith.mulf %28, %24 : vector<2x1x128xf32>
    %30 = arith.addf %5, %29 : vector<2x1x128xf32>
    %cst_8 = arith.constant 5.000000e-01 : f32
    %31 = vector.broadcast %cst_8 : f32 to vector<2x1x128xf32>
    %32 = arith.mulf %31, %27 : vector<2x1x128xf32>
    %33 = arith.addf %6, %32 : vector<2x1x128xf32>
    %34 = arith.subf %30, %18 : vector<2x1x128xf32>
    %35 = arith.divf %34, %12 : vector<2x1x128xf32>
    %36 = arith.subf %33, %21 : vector<2x1x128xf32>
    %37 = arith.divf %36, %15 : vector<2x1x128xf32>
    %38 = arith.divf %24, %12 : vector<2x1x128xf32>
    %39 = math.log %38 : vector<2x1x128xf32>
    %40 = arith.divf %27, %15 : vector<2x1x128xf32>
    %41 = math.log %40 : vector<2x1x128xf32>
    %cst_9 = arith.constant 0.000000e+00 : f32
    %42 = vector.broadcast %cst_9 : f32 to vector<2x1x128xf32>
    %43 = arith.subf %35, %42 : vector<2x1x128xf32>
    %cst_10 = arith.constant 1.000000e-01 : f32
    %44 = vector.broadcast %cst_10 : f32 to vector<2x1x128xf32>
    %45 = arith.divf %43, %44 : vector<2x1x128xf32>
    %cst_11 = arith.constant 0.000000e+00 : f32
    %46 = vector.broadcast %cst_11 : f32 to vector<2x1x128xf32>
    %47 = arith.subf %37, %46 : vector<2x1x128xf32>
    %cst_12 = arith.constant 1.000000e-01 : f32
    %48 = vector.broadcast %cst_12 : f32 to vector<2x1x128xf32>
    %49 = arith.divf %47, %48 : vector<2x1x128xf32>
    %cst_13 = arith.constant 0.000000e+00 : f32
    %50 = vector.broadcast %cst_13 : f32 to vector<2x1x128xf32>
    %51 = arith.subf %39, %50 : vector<2x1x128xf32>
    %cst_14 = arith.constant 2.000000e-01 : f32
    %52 = vector.broadcast %cst_14 : f32 to vector<2x1x128xf32>
    %53 = arith.divf %51, %52 : vector<2x1x128xf32>
    %cst_15 = arith.constant 0.000000e+00 : f32
    %54 = vector.broadcast %cst_15 : f32 to vector<2x1x128xf32>
    %55 = arith.subf %41, %54 : vector<2x1x128xf32>
    %cst_16 = arith.constant 2.000000e-01 : f32
    %56 = vector.broadcast %cst_16 : f32 to vector<2x1x128xf32>
    %57 = arith.divf %55, %56 : vector<2x1x128xf32>
    %cst_17 = arith.constant 0.000000e+00 : f32
    %58 = vector.broadcast %cst_17 : f32 to vector<2x1x128xf32>
    %59 = arith.cmpf ogt, %9, %58 : vector<2x1x128xf32>
    %cst_18 = arith.constant 0.000000e+00 : f32
    %60 = vector.broadcast %cst_18 : f32 to vector<2x1x128xf32>
    %cst_19 = arith.constant 1.000000e+00 : f32
    %61 = vector.broadcast %cst_19 : f32 to vector<2x1x128xf32>
    %62 = arith.select %59, %61, %60 : vector<2x1x128xi1>, vector<2x1x128xf32>
    %63 = arith.select %59, %45, %60 : vector<2x1x128xi1>, vector<2x1x128xf32>
    %c0_20 = arith.constant 0 : index
    %c0_21 = arith.constant 0 : index
    %c0_22 = arith.constant 0 : index
    %64 = vector.load %arg2[%c0_20, %c0_21, %c0_22] : memref<2x8x128xf32, #tpu.memory_space<vmem>>, vector<2x1x128xf32>
    tpu.vector_store %arg2[%c0_20, %c0_21, %c0_22], %63 {strides = array<i32>} : memref<2x8x128xf32, #tpu.memory_space<vmem>>, vector<2x1x128xf32>,
    %65 = arith.select %59, %49, %60 : vector<2x1x128xi1>, vector<2x1x128xf32>
    %c0_23 = arith.constant 0 : index
    %c1 = arith.constant 1 : index
    %c0_24 = arith.constant 0 : index
    %66 = vector.load %arg2[%c0_23, %c1, %c0_24] : memref<2x8x128xf32, #tpu.memory_space<vmem>>, vector<2x1x128xf32>
    tpu.vector_store %arg2[%c0_23, %c1, %c0_24], %65 {strides = array<i32>} : memref<2x8x128xf32, #tpu.memory_space<vmem>>, vector<2x1x128xf32>,
    %67 = arith.select %59, %53, %60 : vector<2x1x128xi1>, vector<2x1x128xf32>
    %c0_25 = arith.constant 0 : index
    %c2 = arith.constant 2 : index
    %c0_26 = arith.constant 0 : index
    %68 = vector.load %arg2[%c0_25, %c2, %c0_26] : memref<2x8x128xf32, #tpu.memory_space<vmem>>, vector<2x1x128xf32>
    tpu.vector_store %arg2[%c0_25, %c2, %c0_26], %67 {strides = array<i32>} : memref<2x8x128xf32, #tpu.memory_space<vmem>>, vector<2x1x128xf32>,
    %69 = arith.select %59, %57, %60 : vector<2x1x128xi1>, vector<2x1x128xf32>
    %c0_27 = arith.constant 0 : index
    %c3 = arith.constant 3 : index
    %c0_28 = arith.constant 0 : index
    %70 = vector.load %arg2[%c0_27, %c3, %c0_28] : memref<2x8x128xf32, #tpu.memory_space<vmem>>, vector<2x1x128xf32>
    tpu.vector_store %arg2[%c0_27, %c3, %c0_28], %69 {strides = array<i32>} : memref<2x8x128xf32, #tpu.memory_space<vmem>>, vector<2x1x128xf32>,
    %c0_29 = arith.constant 0 : index
    %c4 = arith.constant 4 : index
    %c0_30 = arith.constant 0 : index
    %71 = vector.load %arg2[%c0_29, %c4, %c0_30] : memref<2x8x128xf32, #tpu.memory_space<vmem>>, vector<2x1x128xf32>
    tpu.vector_store %arg2[%c0_29, %c4, %c0_30], %62 {strides = array<i32>} : memref<2x8x128xf32, #tpu.memory_space<vmem>>, vector<2x1x128xf32>,
    %c0_31 = arith.constant 0 : index
    %c5 = arith.constant 5 : index
    %c0_32 = arith.constant 0 : index
    %72 = vector.load %arg2[%c0_31, %c5, %c0_32] : memref<2x8x128xf32, #tpu.memory_space<vmem>>, vector<2x1x128xf32>
    tpu.vector_store %arg2[%c0_31, %c5, %c0_32], %62 {strides = array<i32>} : memref<2x8x128xf32, #tpu.memory_space<vmem>>, vector<2x1x128xf32>,
    %c0_33 = arith.constant 0 : index
    %c6 = arith.constant 6 : index
    %c0_34 = arith.constant 0 : index
    %73 = vector.load %arg2[%c0_33, %c6, %c0_34] : memref<2x8x128xf32, #tpu.memory_space<vmem>>, vector<2x1x128xf32>
    tpu.vector_store %arg2[%c0_33, %c6, %c0_34], %62 {strides = array<i32>} : memref<2x8x128xf32, #tpu.memory_space<vmem>>, vector<2x1x128xf32>,
    %c0_35 = arith.constant 0 : index
    %c7 = arith.constant 7 : index
    %c0_36 = arith.constant 0 : index
    %74 = vector.load %arg2[%c0_35, %c7, %c0_36] : memref<2x8x128xf32, #tpu.memory_space<vmem>>, vector<2x1x128xf32>
    tpu.vector_store %arg2[%c0_35, %c7, %c0_36], %62 {strides = array<i32>} : memref<2x8x128xf32, #tpu.memory_space<vmem>>, vector<2x1x128xf32>,
    return
  }
  func.func @transform_0(%arg0: i32) -> (i32, i32, i32) {
    %c0_i32 = arith.constant 0 : i32
    %c0_i32_0 = arith.constant 0 : i32
    %c0_i32_1 = arith.constant 0 : i32
    return %c0_i32, %c0_i32_0, %arg0 : i32, i32, i32
  }
  func.func @transform_1(%arg0: i32) -> (i32, i32, i32) {
    %c0_i32 = arith.constant 0 : i32
    %c0_i32_0 = arith.constant 0 : i32
    %c0_i32_1 = arith.constant 0 : i32
    return %c0_i32, %c0_i32_0, %arg0 : i32, i32, i32
  }
}

</mosaic_0001>

<bundles_post_ra>
// kernel: proposal_target_forward.2
= control target key start
LH: loop header
LB: loop body
LE: loop exit
PB: predicated region body
PF: predicated region fallthrough
CT: control target
= control target key end

     0   :  { %s312_s11 = smov 2   ;;  %v313_v1 = vmov 2   ;;  %s314_s14 = smov 127   ;;  %v315_v8 = vmov 0   ;;  %v316_v12 = vmov 1   ;;  %v317_v13 = vmov 3   ;;  %s407_s1 = inlined_call_operand.vmem [shape: f32[2,8,5], index: 1, kind: input, shape index: {}]   ;;  %s408_s2 = inlined_call_operand.vmem [shape: f32[2,4,128], index: 2, kind: output, shape index: {}]   ;;  %s409_s0 = inlined_call_operand.vmem [shape: f32[2,4,128], index: 0, kind: input, shape index: {}]  }
   0x1   :  { %v13_v0 = vld [vmem:[%s407_s1] sm:$0xff]  ;;  %298 = vset.pattern.permute.xlu1 %v313_v1  ;;  %v14_v2 = vld [vmem:[%s407_s1 + $0x8] sm:$0xff]  ;;  %297 = vset.pattern.permute.xlu0 %v313_v1  ;;  %v318_v21 = vmov 0.0   ;;  %v319_v23 = vmov 4   ;;  %v77_v27 = vlaneseq }
   0x2   :  { %35 = vrot.lane.b32.xlu0 %v13_v0, %s312_s11  ;;  %283 = vst [vmem:[%s408_s2 + $0x3] sm:$0x1] %v318_v21  ;;  %284 = vst [vmem:[%s408_s2 + $0x7] sm:$0x1] %v318_v21  ;;  %v11_v30 = vld [vmem:[%s409_s0] sm:$0xf] }
   0x3   :  { %v357_v29 = vshrl.u32 %v77_v27, 7  ;;  %v17_v32 = vrot.slane %v11_v30, 6  ;;  %v12_v34 = vld [vmem:[%s409_s0 + $0x4] sm:$0xf] }
   0x4   :  { %v18_v40 = vrot.slane %v12_v34, 6 }
   0x5   :  { %v363_v33 = vsub.s32 2, %v357_v29  ;;  %v97_v35 = vsub.s32 0, %v357_v29  ;;  %v121_v36 = vsub.s32 3, %v357_v29  ;;  %v139_v37 = vsub.s32 1, %v357_v29 }
   0x6   :  { %37 = vrot.lane.b32.xlu0 %v14_v2, %s312_s11  ;;  %v21_v39 = vsub.f32 %v11_v30, %v17_v32  ;;  %v22_v51 = vsub.f32 %v12_v34, %v18_v40 }
   0x7   :  { %v98_v41 = vrot.slane %v11_v30, %v97_v35  ;;  %v122_v42 = vrot.slane %v11_v30, %v121_v36  ;;  %v80_v43 = vrot.slane %v11_v30, %v363_v33  ;;  %v140_v44 = vrot.slane %v11_v30, %v139_v37 }
   0x8   :  { %v84_v46 = vrot.slane %v12_v34, %v363_v33  ;;  %v126_v47 = vrot.slane %v12_v34, %v121_v36  ;;  %v144_v48 = vrot.slane %v12_v34, %v139_v37  ;;  %v102_v49 = vrot.slane %v12_v34, %v97_v35 }
   0x9   :  { %v23_v50 = vadd.f32 1.0, %v21_v39  ;;  %v24_v60 = vadd.f32 1.0, %v22_v51 }
   0xb   :  { %v27_v59 = vrot.slane %v23_v50, 1  ;;  %vm55_vm6 = vcmp.eq.f32.partialorder %v23_v50, 1.0  ;;  %vm56_vm7 = vcmp.eq.f32.partialorder %v24_v60, 1.0 }
  0x74   :  { %v36_v3 = vpop.permute.xlu0 %35 }
  0x75   :  { %v41_v4 = vsub.f32 %v13_v0, %v36_v3 }
  0x77   :  { %v43_v5 = vadd.f32 1.0, %v41_v4 }
  0x78   :  { %v38_v6 = vpop.permute.xlu0 %37 }
  0x79   :  { %v42_v7 = vsub.f32 %v14_v2, %v38_v6  ;;  %47 = vrot.lane.b32.xlu1 %v43_v5, %s314_s14  ;;  %vm65_vm0 = vcmp.eq.f32.partialorder %v43_v5, 1.0 }
  0x7a   :  { %v67_v9 = vsel %vm65_vm0, 1, %v315_v8 }
  0x7b   :  { %v44_v10 = vadd.f32 1.0, %v42_v7  ;;  %69 = vrot.lane.b32.xlu0 %v67_v9, %s314_s14  ;;  %v57_v9 = vsel %vm55_vm6, 1, %v315_v8 }
  0x7d   :  { %49 = vrot.lane.b32.xlu1 %v44_v10, %s314_s14  ;;  %vm66_vm1 = vcmp.eq.f32.partialorder %v44_v10, 1.0 }
  0x7e   :  { %v68_v11 = vsel %vm66_vm1, 1, %v315_v8 }
  0x7f   :  { %86 = vperm.xlu0 %297, %v13_v0  }
  0x81   :  { %71 = vrot.lane.b32.xlu1 %v68_v11, %s314_s14 }
  0x83   :  { %300 = vset.pattern.permute.xlu0 %v315_v8 }
  0x84   :  { %108 = vperm.xlu0 %300, %v14_v2  }
  0x85   :  { %90 = vperm.xlu1 %298, %v14_v2  }
  0x88   :  { %302 = vset.pattern.permute.xlu0 %v316_v12 }
  0x89   :  { %299 = vset.pattern.permute.xlu1 %v315_v8  ;;  %146 = vperm.xlu0 %302, %v13_v0  }
  0x8a   :  { %104 = vperm.xlu1 %299, %v13_v0  }
  0x8d   :  { %305 = vset.pattern.permute.xlu0 %v313_v1 }
  0x8e   :  { %301 = vset.pattern.permute.xlu1 %v317_v13 }
  0x8f   :  { %128 = vperm.xlu1 %301, %v13_v0  }
  0x93   :  { %132 = vperm.xlu1 %301, %v14_v2  }
  0x97   :  { %303 = vset.pattern.permute.xlu1 %v316_v12 }
  0x98   :  { %150 = vperm.xlu1 %303, %v14_v2  }
  0x9c   :  { %304 = vset.pattern.permute.xlu1 %v313_v1  ;;  %v31_v1 = vmul.f32 %v27_v59, %v23_v50 }
  0x9e   :  { %v166_v7 = vrot.slane %v31_v1, %v363_v33 }
  0xeb   :  { %v48_v14 = vpop.permute.xlu1 %47 }
  0xec   :  { %v53_v15 = vmul.f32 %v48_v14, %v43_v5 }
  0xed   :  { %v70_v16 = vpop.permute.xlu0 %69 }
  0xee   :  { %vm73_vm2 = vcmp.ne.s32.totalorder %v70_v16, 0  ;;  %173 = vperm.xlu1 %304, %v53_v15   ;;  %v59_v15 = vrot.slane %v57_v9, 1 }
  0xef   :  { %vm75_vm3 = vmand %vm65_vm0, %vm73_vm2  ;;  %v50_v17 = vpop.permute.xlu1 %49 }
  0xf0   :  { %v54_v18 = vmul.f32 %v50_v17, %v44_v10  ;;  %v189_v19 = vsel %vm75_vm3, 1, %v315_v8  ;;  %vm61_vm8 = vcmp.ne.s32.totalorder %v59_v15, 0 }
  0xf1   :  { %vm63_vm9 = vmand %vm55_vm6, %vm61_vm8 }
  0xf2   :  { %178 = vperm.xlu0 %305, %v54_v18   ;;  %192 = vperm.xlu1 %304, %v189_v19   ;;  %v58_v18 = vsel %vm56_vm7, 1, %v315_v8  ;;  %v201_v30 = vsel %vm63_vm9, 1, %v315_v8 }
  0xf3   :  { %v72_v20 = vpop.permute.xlu1 %71  ;;  %v206_v32 = vrot.slane %v201_v30, %v363_v33 }
  0xf4   :  { %vm74_vm4 = vcmp.ne.s32.totalorder %v72_v20, 0 }
  0xf5   :  { %vm76_vm5 = vmand %vm66_vm1, %vm74_vm4  ;;  %vm211_vm12 = vcmp.eq.s32.totalorder %v206_v32, 1 }
  0xf6   :  { %v190_v22 = vsel %vm76_vm5, 1, %v315_v8  ;;  %306 = vset.pattern.permute.xlu0 %v319_v23 }
  0xf7   :  { %195 = vperm.xlu1 %304, %v190_v22   ;;  %252 = vperm.xlu0 %306, %v13_v0  }
  0xfb   :  { %307 = vset.pattern.permute.xlu1 %v319_v23 }
  0xfc   :  { %256 = vperm.xlu1 %307, %v14_v2   ;;  %v28_v2 = vrot.slane %v24_v60, 1 }
  0xfe   :  { %v87_v26 = vpop.permute.xlu0 %86  ;;  %v32_v10 = vmul.f32 %v28_v2, %v24_v60 }
  0xff   :  { %v93_v54 = vmin.f32 %v80_v43, %v87_v26 }
 0x100   :  { %v170_v17 = vrot.slane %v32_v10, %v363_v33 }
 0x103   :  { %v109_v31 = vpop.permute.xlu0 %108 }
 0x104   :  { %v91_v24 = vpop.permute.xlu1 %90  ;;  %v112_v58 = vmax.f32 %v102_v49, %v109_v31 }
 0x105   :  { %v94_v57 = vmin.f32 %v84_v46, %v91_v24  ;;  %v60_v24 = vrot.slane %v58_v18, 1 }
 0x107   :  { %v114_v5 = vsub.f32 %v94_v57, %v112_v58  ;;  %vm62_vm10 = vcmp.ne.s32.totalorder %v60_v24, 0 }
 0x108   :  { %v147_v45 = vpop.permute.xlu0 %146  ;;  %vm64_vm11 = vmand %vm56_vm7, %vm62_vm10 }
 0x109   :  { %v105_v25 = vpop.permute.xlu1 %104  ;;  %v153_v55 = vmax.f32 %v140_v44, %v147_v45  ;;  %v116_v13 = vadd.f32 1.0, %v114_v5  ;;  %v202_v34 = vsel %vm64_vm11, 1, %v315_v8 }
 0x10a   :  { %v111_v52 = vmax.f32 %v98_v41, %v105_v25  ;;  %v210_v37 = vrot.slane %v202_v34, %v363_v33 }
 0x10b   :  { %v118_v20 = vmax.f32 %v116_v13, 0.0 }
 0x10c   :  { %v113_v62 = vsub.f32 %v93_v54, %v111_v52  ;;  %vm212_vm14 = vcmp.eq.s32.totalorder %v210_v37, 1 }
 0x10e   :  { %v129_v28 = vpop.permute.xlu1 %128  ;;  %v115_v3 = vadd.f32 1.0, %v113_v62 }
 0x10f   :  { %v135_v53 = vmin.f32 %v122_v42, %v129_v28 }
 0x110   :  { %v117_v11 = vmax.f32 %v115_v3, 0.0 }
 0x111   :  { %v155_v0 = vsub.f32 %v135_v53, %v153_v55 }
 0x112   :  { %v133_v38 = vpop.permute.xlu1 %132 }
 0x113   :  { %v136_v61 = vmin.f32 %v126_v47, %v133_v38  ;;  %v157_v6 = vadd.f32 1.0, %v155_v0 }
 0x115   :  { %v159_v14 = vmax.f32 %v157_v6, 0.0 }
 0x117   :  { %v151_v56 = vpop.permute.xlu1 %150  ;;  %v161_v21 = vmul.f32 %v159_v14, %v117_v11 }
 0x118   :  { %v154_v63 = vmax.f32 %v144_v48, %v151_v56 }
 0x11a   :  { %v156_v4 = vsub.f32 %v136_v61, %v154_v63 }
 0x11c   :  { %v158_v12 = vadd.f32 1.0, %v156_v4 }
 0x11e   :  { %v160_v19 = vmax.f32 %v158_v12, 0.0 }
 0x120   :  { %v162_v26 = vmul.f32 %v160_v19, %v118_v20 }
 0x16d   :  { %v174_v16 = vpop.permute.xlu1 %173 }
 0x16e   :  { %v181_v22 = vadd.f32 %v174_v16, %v166_v7 }
 0x170   :  { %v183_v23 = vsub.f32 %v181_v22, %v161_v21 }
 0x171   :  { %v179_v25 = vpop.permute.xlu0 %178  ;;  %v193_v31 = vpop.permute.xlu1 %192 }
 0x172   :  { %308 = vrcp.f32 %v183_v23  ;;  %v182_v27 = vadd.f32 %v179_v25, %v170_v17  ;;  %vm197_vm13 = vcmp.eq.s32.totalorder %v193_v31, 1 }
 0x174   :  { %v184_v28 = vsub.f32 %v182_v27, %v162_v26 }
 0x176   :  { %310 = vrcp.f32 %v184_v28  ;;  %v196_v39 = vpop.permute.xlu1 %195  ;;  %v253_v1 = vpop.permute.xlu0 %252 }
 0x177   :  { %vm198_vm15 = vcmp.eq.s32.totalorder %v196_v39, 1 }
 0x17b   :  { %v257_v9 = vpop.permute.xlu1 %256 }
 0x17c   :  { %v309_v35 = vpop.eup %308 }
 0x17d   :  { %v186_v36 = vmul.f32 %v309_v35, %v161_v21 }
 0x17f   :  { %v199_v38 = vsel %vm197_vm13, 0.0, %v186_v36 }
 0x180   :  { %v311_v40 = vpop.eup %310  ;;  %v213_v41 = vsel %vm211_vm12, -1.0, %v199_v38 }
 0x181   :  { %v215_v42 = vrot.slane %v213_v41, 4  ;;  %v188_v43 = vmul.f32 %v311_v40, %v162_v26 }
 0x183   :  { %v216_v44 = vmax.f32 %v213_v41, %v215_v42  ;;  %v200_v45 = vsel %vm198_vm15, 0.0, %v188_v43 }
 0x184   :  { %v214_v46 = vsel %vm212_vm14, -1.0, %v200_v45 }
 0x185   :  { %v217_v47 = vrot.slane %v216_v44, 2  ;;  %v221_v48 = vrot.slane %v214_v46, 4 }
 0x187   :  { %v218_v8 = vmax.f32 %v216_v44, %v217_v47  ;;  %v222_v49 = vmax.f32 %v214_v46, %v221_v48 }
 0x189   :  { %v219_v50 = vrot.slane %v218_v8, 1  ;;  %v223_v51 = vrot.slane %v222_v49, 2 }
 0x18b   :  { %v220_v52 = vmax.f32 %v218_v8, %v219_v50  ;;  %v224_v33 = vmax.f32 %v222_v49, %v223_v51 }
 0x18d   :  { %vm229_vm0 = vcmp.eq.f32.partialorder %v213_v41, %v220_v52  ;;  %275 = vst [vmem:[%s408_s2] sm:$0x1] %v220_v52  ;;  %v225_v53 = vrot.slane %v224_v33, 1 }
 0x18e   :  { %v231_v54 = vsel %vm229_vm0, %v357_v29, 8 }
 0x18f   :  { %v233_v55 = vrot.slane %v231_v54, 4  ;;  %v226_v56 = vmax.f32 %v224_v33, %v225_v53 }
 0x191   :  { %vm234_vm1 = vcmp.lt.s32.totalorder %v231_v54, %v233_v55  ;;  %vm230_vm2 = vcmp.eq.f32.partialorder %v214_v46, %v226_v56  ;;  %276 = vst [vmem:[%s408_s2 + $0x4] sm:$0x1] %v226_v56 }
 0x192   :  { %v232_v57 = vsel %vm230_vm2, %v357_v29, 8  ;;  %v235_v58 = vsel %vm234_vm1, %v231_v54, %v233_v55 }
 0x193   :  { %v242_v59 = vrot.slane %v232_v57, 4  ;;  %v236_v60 = vrot.slane %v235_v58, 2 }
 0x195   :  { %vm243_vm3 = vcmp.lt.s32.totalorder %v232_v57, %v242_v59  ;;  %vm237_vm4 = vcmp.lt.s32.totalorder %v235_v58, %v236_v60 }
 0x196   :  { %v238_v61 = vsel %vm237_vm4, %v235_v58, %v236_v60  ;;  %v244_v62 = vsel %vm243_vm3, %v232_v57, %v242_v59 }
 0x197   :  { %v239_v63 = vrot.slane %v238_v61, 1  ;;  %v245_v0 = vrot.slane %v244_v62, 2 }
 0x199   :  { %vm240_vm5 = vcmp.lt.s32.totalorder %v238_v61, %v239_v63  ;;  %vm246_vm6 = vcmp.lt.s32.totalorder %v244_v62, %v245_v0 }
 0x19a   :  { %v241_v2 = vsel %vm240_vm5, %v238_v61, %v239_v63  ;;  %v247_v3 = vsel %vm246_vm6, %v244_v62, %v245_v0 }
 0x19b   :  { %vm259_vm7 = vcmp.eq.s32.totalorder %v357_v29, %v241_v2  ;;  %v277_v4 = vcvt.s32.f32 %v241_v2  ;;  %v248_v5 = vrot.slane %v247_v3, 1 }
 0x19c   :  { %v261_v6 = vsel %vm259_vm7, %v253_v1, -1.0 }
 0x19d   :  { %v263_v7 = vrot.slane %v261_v6, 4  ;;  %279 = vst [vmem:[%s408_s2 + $0x1] sm:$0x1] %v277_v4  ;;  %vm249_vm8 = vcmp.lt.s32.totalorder %v247_v3, %v248_v5 }
 0x19e   :  { %v250_v10 = vsel %vm249_vm8, %v247_v3, %v248_v5 }
 0x19f   :  { %v264_v11 = vmax.f32 %v261_v6, %v263_v7  ;;  %vm260_vm9 = vcmp.eq.s32.totalorder %v357_v29, %v250_v10  ;;  %v278_v12 = vcvt.s32.f32 %v250_v10 }
 0x1a0   :  { %v262_v13 = vsel %vm260_vm9, %v257_v9, -1.0 }
 0x1a1   :  { %v265_v14 = vrot.slane %v264_v11, 2  ;;  %v269_v15 = vrot.slane %v262_v13, 4  ;;  %280 = vst [vmem:[%s408_s2 + $0x5] sm:$0x1] %v278_v12 }
 0x1a3   :  { %v266_v16 = vmax.f32 %v264_v11, %v265_v14  ;;  %v270_v17 = vmax.f32 %v262_v13, %v269_v15 }
 0x1a5   :  { %v267_v18 = vrot.slane %v266_v16, 1  ;;  %v271_v19 = vrot.slane %v270_v17, 2 }
 0x1a7   :  { %v268_v20 = vmax.f32 %v266_v16, %v267_v18  ;;  %v272_v21 = vmax.f32 %v270_v17, %v271_v19 }
 0x1a9   :  { %281 = vst [vmem:[%s408_s2 + $0x2] sm:$0x1] %v268_v20  ;;  %v273_v22 = vrot.slane %v272_v21, 1 }
 0x1ab   :  { %v274_v29 = vmax.f32 %v272_v21, %v273_v22 }
 0x1ad   :  { %282 = vst [vmem:[%s408_s2 + $0x6] sm:$0x1] %v274_v29 }

// kernel: proposal_target_forward.3
= control target key start
LH: loop header
LB: loop body
LE: loop exit
PB: predicated region body
PF: predicated region fallthrough
CT: control target
= control target key end

     0   :  { %v133_v6 = vmov 0.0   ;;  %s230_s0 = inlined_call_operand.vmem [shape: f32[2,9,128], index: 0, kind: input, shape index: {}]   ;;  %s231_s1 = inlined_call_operand.vmem [shape: f32[2,8,128], index: 1, kind: output, shape index: {}]  }
   0x1   :  { %v8_v0 = vld [vmem:[%s230_s0] sm:$0xff]  ;;  %v150_v1 = vld [vmem:[%s230_s0 + $0x8] sm:$0x1]  ;;  %v10_v2 = vld [vmem:[%s230_s0 + $0x10] sm:$0xff] }
   0x2   :  { %v14_v3 = vrot.slane %v8_v0, 6  ;;  %vm68_vm0 = vcmp.gt.f32.partialorder %v150_v1, 0.0  ;;  %v159_v4 = vld [vmem:[%s230_s0 + $0x18] sm:$0x1]  ;;  %v15_v5 = vrot.slane %v10_v2, 6 }
   0x3   :  { %vm69_vm1 = vcmp.gt.f32.partialorder %v159_v4, 0.0  ;;  %v70_v7 = vsel %vm68_vm0, 1.0, %v133_v6 }
   0x4   :  { %v18_v8 = vsub.f32 %v8_v0, %v14_v3  ;;  %v19_v9 = vsub.f32 %v10_v2, %v15_v5  ;;  %108 = vst [vmem:[%s231_s1 + $0x4] sm:$0x1] %v70_v7  ;;  %110 = vst [vmem:[%s231_s1 + $0x5] sm:$0x1] %v70_v7  ;;  %v71_v10 = vsel %vm69_vm1, 1.0, %v133_v6 }
   0x5   :  { %112 = vst [vmem:[%s231_s1 + $0x6] sm:$0x1] %v70_v7  ;;  %114 = vst [vmem:[%s231_s1 + $0x7] sm:$0x1] %v70_v7 }
   0x6   :  { %109 = vst [vmem:[%s231_s1 + $0xc] sm:$0x1] %v71_v10  ;;  %111 = vst [vmem:[%s231_s1 + $0xd] sm:$0x1] %v71_v10  ;;  %v20_v11 = vadd.f32 1.0, %v18_v8  ;;  %v21_v12 = vadd.f32 1.0, %v19_v9 }
   0x7   :  { %113 = vst [vmem:[%s231_s1 + $0xe] sm:$0x1] %v71_v10  ;;  %115 = vst [vmem:[%s231_s1 + $0xf] sm:$0x1] %v71_v10 }
   0x8   :  { %v22_v13 = vmul.f32 0.5, %v20_v11  ;;  %v42_v14 = vrot.slane %v20_v11, 6  ;;  %v23_v15 = vmul.f32 0.5, %v21_v12  ;;  %v43_v16 = vrot.slane %v21_v12, 6 }
   0x9   :  { %v50_v17 = vrot.slane %v20_v11, 4  ;;  %v51_v18 = vrot.slane %v21_v12, 4 }
   0xa   :  { %v26_v19 = vrot.slane %v22_v13, 2  ;;  %121 = vrcp.f32 %v42_v14  ;;  %v27_v20 = vrot.slane %v23_v15, 2 }
   0xb   :  { %123 = vrcp.f32 %v43_v16 }
   0xc   :  { %v30_v21 = vadd.f32 %v26_v19, %v8_v0  ;;  %v31_v22 = vadd.f32 %v27_v20, %v10_v2  ;;  %125 = vrcp.f32 %v50_v17 }
   0xd   :  { %127 = vrcp.f32 %v51_v18 }
   0xe   :  { %v34_v23 = vrot.slane %v30_v21, 4  ;;  %v35_v24 = vrot.slane %v31_v22, 4 }
  0x10   :  { %v38_v25 = vsub.f32 %v30_v21, %v34_v23  ;;  %v39_v26 = vsub.f32 %v31_v22, %v35_v24 }
  0x14   :  { %v122_v27 = vpop.eup %121 }
  0x15   :  { %v124_v28 = vpop.eup %123  ;;  %v47_v29 = vmul.f32 %v122_v27, %v38_v25 }
  0x16   :  { %v126_v30 = vpop.eup %125  ;;  %v49_v31 = vmul.f32 %v124_v28, %v39_v26 }
  0x17   :  { %v128_v32 = vpop.eup %127  ;;  %v63_v33 = vmul.f32 10.0, %v47_v29  ;;  %v55_v34 = vmul.f32 %v126_v30, %v20_v11 }
  0x18   :  { %v64_v35 = vmul.f32 10.0, %v49_v31  ;;  %v57_v36 = vmul.f32 %v128_v32, %v21_v12 }
  0x19   :  { %v74_v37 = vrot.slane %v63_v33, 4  ;;  %v82_v38 = vrot.slane %v63_v33, 5  ;;  %129 = vlog2.f32 %v55_v34 }
  0x1a   :  { %v75_v39 = vrot.slane %v64_v35, 4  ;;  %v83_v40 = vrot.slane %v64_v35, 5  ;;  %131 = vlog2.f32 %v57_v36 }
  0x1b   :  { %v78_v41 = vsel %vm68_vm0, %v74_v37, 0.0  ;;  %v86_v42 = vsel %vm68_vm0, %v82_v38, 0.0 }
  0x1c   :  { %80 = vst [vmem:[%s231_s1] sm:$0x1] %v78_v41  ;;  %v79_v43 = vsel %vm69_vm1, %v75_v39, 0.0  ;;  %88 = vst [vmem:[%s231_s1 + $0x1] sm:$0x1] %v86_v42  ;;  %v87_v44 = vsel %vm69_vm1, %v83_v40, 0.0 }
  0x1d   :  { %81 = vst [vmem:[%s231_s1 + $0x8] sm:$0x1] %v79_v43  ;;  %89 = vst [vmem:[%s231_s1 + $0x9] sm:$0x1] %v87_v44 }
  0x23   :  { %v130_v45 = vpop.eup %129 }
  0x24   :  { %v132_v46 = vpop.eup %131  ;;  %v59_v47 = vmul.f32 0.6931472, %v130_v45 }
  0x25   :  { %v61_v48 = vmul.f32 0.6931472, %v132_v46 }
  0x26   :  { %v66_v49 = vmul.f32 5.0, %v59_v47 }
  0x27   :  { %v67_v50 = vmul.f32 5.0, %v61_v48 }
  0x28   :  { %v92_v51 = vrot.slane %v66_v49, 6  ;;  %v100_v52 = vrot.slane %v66_v49, 7 }
  0x29   :  { %v93_v53 = vrot.slane %v67_v50, 6  ;;  %v101_v54 = vrot.slane %v67_v50, 7 }
  0x2a   :  { %v96_v55 = vsel %vm68_vm0, %v92_v51, 0.0  ;;  %v104_v56 = vsel %vm68_vm0, %v100_v52, 0.0 }
  0x2b   :  { %98 = vst [vmem:[%s231_s1 + $0x2] sm:$0x1] %v96_v55  ;;  %v97_v57 = vsel %vm69_vm1, %v93_v53, 0.0  ;;  %106 = vst [vmem:[%s231_s1 + $0x3] sm:$0x1] %v104_v56  ;;  %v105_v58 = vsel %vm69_vm1, %v101_v54, 0.0 }
  0x2c   :  { %99 = vst [vmem:[%s231_s1 + $0xa] sm:$0x1] %v97_v57  ;;  %107 = vst [vmem:[%s231_s1 + $0xb] sm:$0x1] %v105_v58 }

</bundles_post_ra>
